<compile_context>
chip_gen: v7x
topology: tpu7x:2x2x1
jax: 0.10.0
libtpu: 0.0.40
codegen_flags: <defaults>
</compile_context>

<pallas_src>
import jax
import jax.numpy as jnp
from jax.experimental import pallas as pl
from jax.experimental.pallas import tpu as pltpu


def image_encoder_forward(x_nchw, conv_w, conv_b, proj_w, proj_b, *, batch_tile=None):
    """Fused ImageEncoder forward.

    x_nchw : (B, Cin, H, W)  float32  -- PyTorch NCHW convention
    conv_w : (Cout, Cin, kh, kw)      -- PyTorch Conv2d weight layout
    conv_b : (Cout,)
    proj_w : (E, Cout)                -- PyTorch Linear weight layout (out, in)
    proj_b : (E,)
    returns: (B, E) float32 embeddings
    """
    B, Cin, H, W = x_nchw.shape
    Cout, _, kh, kw = conv_w.shape
    E = proj_w.shape[0]
    ph, pw = kh // 2, kw // 2               # "same" padding (odd kernels)
    Hp, Wp = H + 2 * ph, W + 2 * pw
    K = Wp * Cin                            # contraction dim of each conv matmul
    N = W * Cout                            # lane-dense feature width

    if batch_tile is None:
        batch_tile = 2 if B >= 2 else 1
    # Pad the batch so it divides evenly into grid steps (zeros are discarded).
    n_steps = -(-B // batch_tile)
    B_pad = n_steps * batch_tile

    # ---- host-side prep (cheap; no 9x im2col read blowup) -------------------
    x = jnp.transpose(x_nchw, (0, 2, 3, 1)).astype(jnp.float32)        # NHWC
    x_pad = jnp.pad(x, ((0, B_pad - B), (ph, ph), (pw, pw), (0, 0)))   # (Bp,Hp,Wp,Cin)
    x_flat = x_pad.reshape(B_pad, Hp, K)                               # (Bp,Hp,Wp*Cin)

    # Banded (Toeplitz along W) conv weight:
    #   w_band[dh, wp*Cin + ci, w*Cout + co] = conv_w[co, ci, dh, wp - w]
    #   for 0 <= wp - w < kw, else 0.
    w_t = jnp.transpose(conv_w, (2, 3, 1, 0)).astype(jnp.float32)      # (kh,kw,Cin,Cout)
    wp_i = jnp.arange(Wp)[:, None]                                     # (Wp,1)
    w_i = jnp.arange(W)[None, :]                                       # (1,W)
    dj = wp_i - w_i                                                    # (Wp,W)
    valid = (dj >= 0) & (dj < kw)
    band = w_t[:, jnp.clip(dj, 0, kw - 1), :, :]                       # (kh,Wp,W,Cin,Cout)
    band = jnp.where(valid[None, :, :, None, None], band, 0.0)
    w_band = jnp.transpose(band, (0, 1, 3, 2, 4)).reshape(kh, K, N)    # (kh,K,N)

    # Conv bias replicated per output column (w, co) -> index w*Cout + co.
    bc = jnp.tile(conv_b.astype(jnp.float32), (W,)).reshape(1, N)      # (1,N)
    # Global-average-pool over W folded into the projection weight (1/(H*W) scale);
    # the H-sum is done in-kernel as a cheap cross-sublane reduce.
    wp_pool = (jnp.tile(jnp.transpose(proj_w).astype(jnp.float32), (W, 1))
               / float(H * W))                                         # (N,E)
    bp = proj_b.reshape(1, E).astype(jnp.float32)

    # ---- Pallas kernel: conv (banded matmuls) + bias + ReLU + pool + project ----
    def kernel(x_ref, wb_ref, bc_ref, wpp_ref, bp_ref, o_ref):
        # x_ref : (batch_tile, Hp, K)     wb_ref : (kh, K, N)
        # bc_ref: (1, N)                  wpp_ref: (N, E)     bp_ref: (1, E)
        # o_ref : (1, batch_tile, E)
        acc = jnp.zeros((batch_tile * H, N), dtype=jnp.float32)
        for di in range(kh):                              # kh shifted-row taps
            # Stack the step's images along the sublane axis -> one MXU matmul/tap.
            rows = jnp.concatenate(
                [x_ref[b, di:di + H, :] for b in range(batch_tile)], axis=0)
            acc = acc + jnp.dot(rows, wb_ref[di],
                                preferred_element_type=jnp.float32)   # (bt*H, N)
        feat = jnp.maximum(acc + bc_ref[...], 0.0)        # bias + ReLU
        # H-sum per image (mean scale is folded into wpp); H multiple of 8, so the
        # reshape stays tile-aligned.
        pooled = jnp.sum(feat.reshape(batch_tile, H, N), axis=1)      # (bt, N)
        # Projection (W-mean folded into wpp); dropout is identity in eval mode.
        emb = jnp.dot(pooled, wpp_ref[...],
                      preferred_element_type=jnp.float32) + bp_ref[...]  # (bt, E)
        o_ref[0] = emb.astype(o_ref.dtype)

    out = pl.pallas_call(
        kernel,
        out_shape=jax.ShapeDtypeStruct((n_steps, batch_tile, E), jnp.float32),
        grid_spec=pltpu.PrefetchScalarGridSpec(
            num_scalar_prefetch=0,
            grid=(n_steps,),
            in_specs=[
                pl.BlockSpec((batch_tile, Hp, K), lambda b: (b, 0, 0)),  # padded imgs
                pl.BlockSpec((kh, K, N), lambda b: (0, 0, 0)),           # banded conv w
                pl.BlockSpec((1, N), lambda b: (0, 0)),                  # conv bias
                pl.BlockSpec((N, E), lambda b: (0, 0)),                  # pool+proj w
                pl.BlockSpec((1, E), lambda b: (0, 0)),                  # proj bias
            ],
            out_specs=pl.BlockSpec((1, batch_tile, E), lambda b: (b, 0, 0)),
        ),
        compiler_params=pltpu.CompilerParams(
            dimension_semantics=("parallel",)),            # shards across TCs on v7x
    )(x_flat, w_band, bc, wp_pool, bp)

    return out.reshape(B_pad, E)[:B]


# ----------------------------------------------------------------------------
# Pure-JAX reference (same math) for a correctness sanity check.
# ----------------------------------------------------------------------------
def _reference_forward(x_nchw, conv_w, conv_b, proj_w, proj_b):
    y = jax.lax.conv_general_dilated(
        x_nchw.astype(jnp.float32), conv_w.astype(jnp.float32),
        window_strides=(1, 1), padding="SAME",
        dimension_numbers=("NCHW", "OIHW", "NCHW"))
    y = y + conv_b.reshape(1, -1, 1, 1)
    y = jnp.maximum(y, 0.0)
    pooled = jnp.mean(y, axis=(2, 3))                             # (B, Cout)
    return pooled @ proj_w.T + proj_b                             # (B, E)


if __name__ == "__main__":
    # Small shapes consistent with the module's forward.
    B, Cin, H, W = 4, 3, 16, 16
    Cout = 32            # == feature_extractor.fc.in_channels  (in_features)
    E = 128              # == embedding_length (chosen lane-dense)
    kh = kw = 3

    key = jax.random.PRNGKey(0)
    k_x, k_cw, k_cb, k_pw, k_pb = jax.random.split(key, 5)

    x = jax.random.normal(k_x, (B, Cin, H, W), dtype=jnp.float32)
    conv_w = jax.random.normal(k_cw, (Cout, Cin, kh, kw), dtype=jnp.float32) * 0.1
    conv_b = jax.random.normal(k_cb, (Cout,), dtype=jnp.float32) * 0.1
    proj_w = jax.random.normal(k_pw, (E, Cout), dtype=jnp.float32) * 0.1
    proj_b = jax.random.normal(k_pb, (E,), dtype=jnp.float32) * 0.1

    out = jax.block_until_ready(
        image_encoder_forward(x, conv_w, conv_b, proj_w, proj_b))
    ref = jax.block_until_ready(
        _reference_forward(x, conv_w, conv_b, proj_w, proj_b))

    assert out.shape == (B, E), out.shape
    assert jnp.allclose(out, ref, atol=2e-3, rtol=2e-3), \
        f"max err {jnp.max(jnp.abs(out - ref))}"

    print("KERNEL_OK")
</pallas_src>

<mosaic_0001>
module attributes {stable_mosaic.version = 11 : i64} {
  func.func @kernel(%arg0: i32, %arg1: memref<2x18x54xf32, #tpu.memory_space<vmem>>, %arg2: memref<3x54x512xf32, #tpu.memory_space<vmem>>, %arg3: memref<1x512xf32, #tpu.memory_space<vmem>>, %arg4: memref<512x128xf32, #tpu.memory_space<vmem>>, %arg5: memref<1x128xf32, #tpu.memory_space<vmem>>, %arg6: memref<1x2x128xf32, #tpu.memory_space<vmem>>) attributes {dimension_semantics = [#tpu.dimension_semantics<parallel>], iteration_bounds = array<i64: 2>, scalar_prefetch = 0 : i64, scratch_operands = 0 : i64, tpu.core_type = #tpu.core_type<tc>, window_params = [{transform_indices = @transform_0, window_bounds = array<i64: 2, 18, 54>}, {pipeline_mode = #tpu.pipeline_mode<synchronous>, transform_indices = @transform_1, window_bounds = array<i64: 3, 54, 512>}, {pipeline_mode = #tpu.pipeline_mode<synchronous>, transform_indices = @transform_2, window_bounds = array<i64: 1, 512>}, {pipeline_mode = #tpu.pipeline_mode<synchronous>, transform_indices = @transform_3, window_bounds = array<i64: 512, 128>}, {pipeline_mode = #tpu.pipeline_mode<synchronous>, transform_indices = @transform_4, window_bounds = array<i64: 1, 128>}, {transform_indices = @transform_5, window_bounds = array<i64: 1, 2, 128>}]} {
    %cst = arith.constant 0.000000e+00 : f32
    %0 = vector.broadcast %cst : f32 to vector<32x512xf32>
    %c0 = arith.constant 0 : index
    %c0_0 = arith.constant 0 : index
    %c0_1 = arith.constant 0 : index
    %1 = vector.load %arg1[%c0, %c0_0, %c0_1] : memref<2x18x54xf32, #tpu.memory_space<vmem>>, vector<1x16x54xf32>
    %2 = vector.shape_cast %1 : vector<1x16x54xf32> to vector<16x54xf32>
    %c1 = arith.constant 1 : index
    %c0_2 = arith.constant 0 : index
    %c0_3 = arith.constant 0 : index
    %3 = vector.load %arg1[%c1, %c0_2, %c0_3] : memref<2x18x54xf32, #tpu.memory_space<vmem>>, vector<1x16x54xf32>
    %4 = vector.shape_cast %3 : vector<1x16x54xf32> to vector<16x54xf32>
    %5 = tpu.concatenate %2, %4 in 0 : vector<16x54xf32>, vector<16x54xf32> -> vector<32x54xf32>
    %c0_4 = arith.constant 0 : index
    %c0_5 = arith.constant 0 : index
    %c0_6 = arith.constant 0 : index
    %6 = vector.load %arg2[%c0_4, %c0_5, %c0_6] : memref<3x54x512xf32, #tpu.memory_space<vmem>>, vector<1x54x512xf32>
    %7 = vector.shape_cast %6 : vector<1x54x512xf32> to vector<54x512xf32>
    %cst_7 = arith.constant dense<0.000000e+00> : vector<32x512xf32>
    %8 = tpu.matmul %5, %7, %cst_7 {dimension_numbers = #tpu.dot_dimension_numbers<[1], [0], [0], [1], [0, 0, 1, 1], [], []>} : vector<32x54xf32>, vector<54x512xf32>, vector<32x512xf32> -> vector<32x512xf32>
    %9 = arith.addf %0, %8 : vector<32x512xf32>
    %c0_8 = arith.constant 0 : index
    %c1_9 = arith.constant 1 : index
    %c0_10 = arith.constant 0 : index
    %10 = vector.load %arg1[%c0_8, %c1_9, %c0_10] : memref<2x18x54xf32, #tpu.memory_space<vmem>>, vector<1x16x54xf32>
    %11 = vector.shape_cast %10 : vector<1x16x54xf32> to vector<16x54xf32>
    %c1_11 = arith.constant 1 : index
    %c1_12 = arith.constant 1 : index
    %c0_13 = arith.constant 0 : index
    %12 = vector.load %arg1[%c1_11, %c1_12, %c0_13] : memref<2x18x54xf32, #tpu.memory_space<vmem>>, vector<1x16x54xf32>
    %13 = vector.shape_cast %12 : vector<1x16x54xf32> to vector<16x54xf32>
    %14 = tpu.concatenate %11, %13 in 0 : vector<16x54xf32>, vector<16x54xf32> -> vector<32x54xf32>
    %c1_14 = arith.constant 1 : index
    %c0_15 = arith.constant 0 : index
    %c0_16 = arith.constant 0 : index
    %15 = vector.load %arg2[%c1_14, %c0_15, %c0_16] : memref<3x54x512xf32, #tpu.memory_space<vmem>>, vector<1x54x512xf32>
    %16 = vector.shape_cast %15 : vector<1x54x512xf32> to vector<54x512xf32>
    %cst_17 = arith.constant dense<0.000000e+00> : vector<32x512xf32>
    %17 = tpu.matmul %14, %16, %cst_17 {dimension_numbers = #tpu.dot_dimension_numbers<[1], [0], [0], [1], [0, 0, 1, 1], [], []>} : vector<32x54xf32>, vector<54x512xf32>, vector<32x512xf32> -> vector<32x512xf32>
    %18 = arith.addf %9, %17 : vector<32x512xf32>
    %c0_18 = arith.constant 0 : index
    %c2 = arith.constant 2 : index
    %c0_19 = arith.constant 0 : index
    %19 = vector.load %arg1[%c0_18, %c2, %c0_19] : memref<2x18x54xf32, #tpu.memory_space<vmem>>, vector<1x16x54xf32>
    %20 = vector.shape_cast %19 : vector<1x16x54xf32> to vector<16x54xf32>
    %c1_20 = arith.constant 1 : index
    %c2_21 = arith.constant 2 : index
    %c0_22 = arith.constant 0 : index
    %21 = vector.load %arg1[%c1_20, %c2_21, %c0_22] : memref<2x18x54xf32, #tpu.memory_space<vmem>>, vector<1x16x54xf32>
    %22 = vector.shape_cast %21 : vector<1x16x54xf32> to vector<16x54xf32>
    %23 = tpu.concatenate %20, %22 in 0 : vector<16x54xf32>, vector<16x54xf32> -> vector<32x54xf32>
    %c2_23 = arith.constant 2 : index
    %c0_24 = arith.constant 0 : index
    %c0_25 = arith.constant 0 : index
    %24 = vector.load %arg2[%c2_23, %c0_24, %c0_25] : memref<3x54x512xf32, #tpu.memory_space<vmem>>, vector<1x54x512xf32>
    %25 = vector.shape_cast %24 : vector<1x54x512xf32> to vector<54x512xf32>
    %cst_26 = arith.constant dense<0.000000e+00> : vector<32x512xf32>
    %26 = tpu.matmul %23, %25, %cst_26 {dimension_numbers = #tpu.dot_dimension_numbers<[1], [0], [0], [1], [0, 0, 1, 1], [], []>} : vector<32x54xf32>, vector<54x512xf32>, vector<32x512xf32> -> vector<32x512xf32>
    %27 = arith.addf %18, %26 : vector<32x512xf32>
    %c0_27 = arith.constant 0 : index
    %c0_28 = arith.constant 0 : index
    %28 = vector.load %arg3[%c0_27, %c0_28] : memref<1x512xf32, #tpu.memory_space<vmem>>, vector<1x512xf32>
    %29 = vector.broadcast %28 : vector<1x512xf32> to vector<32x512xf32>
    %30 = arith.addf %27, %29 : vector<32x512xf32>
    %cst_29 = arith.constant 0.000000e+00 : f32
    %31 = vector.broadcast %cst_29 : f32 to vector<32x512xf32>
    %32 = arith.maximumf %30, %31 : vector<32x512xf32>
    %33 = vector.shape_cast %32 : vector<32x512xf32> to vector<2x16x512xf32>
    %cst_30 = arith.constant dense<0.000000e+00> : vector<2x512xf32>
    %34 = vector.multi_reduction <add>, %33, %cst_30 [1] : vector<2x16x512xf32> to vector<2x512xf32>
    %c0_31 = arith.constant 0 : index
    %c0_32 = arith.constant 0 : index
    %35 = vector.load %arg4[%c0_31, %c0_32] : memref<512x128xf32, #tpu.memory_space<vmem>>, vector<512x128xf32>
    %cst_33 = arith.constant dense<0.000000e+00> : vector<2x128xf32>
    %36 = tpu.matmul %34, %35, %cst_33 {dimension_numbers = #tpu.dot_dimension_numbers<[1], [0], [0], [1], [0, 0, 1, 1], [], []>} : vector<2x512xf32>, vector<512x128xf32>, vector<2x128xf32> -> vector<2x128xf32>
    %c0_34 = arith.constant 0 : index
    %c0_35 = arith.constant 0 : index
    %37 = vector.load %arg5[%c0_34, %c0_35] : memref<1x128xf32, #tpu.memory_space<vmem>>, vector<1x128xf32>
    %38 = vector.broadcast %37 : vector<1x128xf32> to vector<2x128xf32>
    %39 = arith.addf %36, %38 : vector<2x128xf32>
    %c0_36 = arith.constant 0 : index
    %c0_37 = arith.constant 0 : index
    %c0_38 = arith.constant 0 : index
    %40 = vector.load %arg6[%c0_36, %c0_37, %c0_38] : memref<1x2x128xf32, #tpu.memory_space<vmem>>, vector<1x2x128xf32>
    %41 = vector.shape_cast %40 : vector<1x2x128xf32> to vector<2x128xf32>
    %42 = vector.shape_cast %39 : vector<2x128xf32> to vector<1x2x128xf32>
    tpu.vector_store %arg6[%c0_36, %c0_37, %c0_38], %42 {strides = array<i32>} : memref<1x2x128xf32, #tpu.memory_space<vmem>>, vector<1x2x128xf32>,
    return
  }
  func.func @transform_0(%arg0: i32) -> (i32, i32, i32) {
    %c0_i32 = arith.constant 0 : i32
    %c0_i32_0 = arith.constant 0 : i32
    %c0_i32_1 = arith.constant 0 : i32
    return %arg0, %c0_i32, %c0_i32_0 : i32, i32, i32
  }
  func.func @transform_1(%arg0: i32) -> (i32, i32, i32) {
    %c0_i32 = arith.constant 0 : i32
    %c0_i32_0 = arith.constant 0 : i32
    %c0_i32_1 = arith.constant 0 : i32
    %c0_i32_2 = arith.constant 0 : i32
    return %c0_i32, %c0_i32_0, %c0_i32_1 : i32, i32, i32
  }
  func.func @transform_2(%arg0: i32) -> (i32, i32) {
    %c0_i32 = arith.constant 0 : i32
    %c0_i32_0 = arith.constant 0 : i32
    %c0_i32_1 = arith.constant 0 : i32
    return %c0_i32, %c0_i32_0 : i32, i32
  }
  func.func @transform_3(%arg0: i32) -> (i32, i32) {
    %c0_i32 = arith.constant 0 : i32
    %c0_i32_0 = arith.constant 0 : i32
    %c0_i32_1 = arith.constant 0 : i32
    return %c0_i32, %c0_i32_0 : i32, i32
  }
  func.func @transform_4(%arg0: i32) -> (i32, i32) {
    %c0_i32 = arith.constant 0 : i32
    %c0_i32_0 = arith.constant 0 : i32
    %c0_i32_1 = arith.constant 0 : i32
    return %c0_i32, %c0_i32_0 : i32, i32
  }
  func.func @transform_5(%arg0: i32) -> (i32, i32, i32) {
    %c0_i32 = arith.constant 0 : i32
    %c0_i32_0 = arith.constant 0 : i32
    %c0_i32_1 = arith.constant 0 : i32
    return %arg0, %c0_i32, %c0_i32_0 : i32, i32, i32
  }
}

</mosaic_0001>

<bundles_post_ra>
// kernel: tpu_custom_call.1
= control target key start
LH: loop header
LB: loop body
LE: loop exit
PB: predicated region body
PF: predicated region fallthrough
CT: control target
= control target key end

     0   :  { %10 = vsyncpa [#allocation3], 0  ;;  %s2203_s0 = inlined_call_operand.vmem [shape: f32[4,18,54], index: 0, kind: input, shape index: {}]   ;;  %s2204_s1 = inlined_call_operand.hbm [shape: f32[3,54,512], index: 1, kind: input, shape index: {}]   ;;  %s2205_s2 = inlined_call_operand.vmem [shape: f32[1,512], index: 2, kind: input, shape index: {}]   ;;  %s2206_s3 = inlined_call_operand.hbm [shape: f32[512,128], index: 3, kind: input, shape index: {}]   ;;  %s2207_s4 = inlined_call_operand.vmem [shape: f32[1,128], index: 4, kind: input, shape index: {}]   ;;  %s2208_s5 = inlined_call_operand.hbm [shape: f32[2,2,128], index: 5, kind: output, shape index: {}]  }
   0x1   :  { %11 = vsyncpa [#allocation6], 0 }
   0x2   :  { %12 = vsyncpa [#allocation4], 0 }
   0x3   :  { %14 = vsyncpa [#allocation4 + $0x1], 0  ;;  %s1943_s18 = smov 0   ;;  %s1945_s19 = smov 0  }
   0x4   :  { %s1947_s20 = smov 0   ;;  %s1949_s21 = smov 0  }
   0x5 LB: > { %s1964_s22 = sadd.s32 4294967295, %s1903_s21   ;;  %s1415_s23 = sadd.s32 4294967294, %s1903_s21   ;;  %s1903_s21 = sphi %s1949_s21, %s2227_s21   ;;  %s1899_s20 = sphi %s1947_s20, %s2226_s20   ;;  %s1895_s19 = sphi %s1945_s19, %s2225_s19   ;;  %s1891_s18 = sphi %s1943_s18, %s2224_s18  }
   0x6   : > { %s1968_s24 = sadd.s32 1, %s1903_s21   ;;  %s137_s25 = sadd.s32 1, %s1899_s20 }
   0x7   : > { %s134_s26 = ssub.s32 %s1903_s21, %s1968_s24  ;;  %p147_p0 = scmp.ne.s32.totalorder %s1899_s20, %s1895_s19 }
   0x8   : > { %p135_p1 = scmp.eq.s32.totalorder %s134_s26, 0  ;;  %p148_p2 = scmp.eq.s32.totalorder %s1964_s22, 1 }
   0x9   : > { %p153_p3 = scmp.ne.s32.totalorder %s1895_s19, %s1891_s18  ;;  %p154_p4 = scmp.eq.s32.totalorder %s1415_s23, 1 }
   0xa   : > { %s1979_s27 = scalar_select %p135_p1, %s1899_s20, %s137_s25  }
   0xb   : > { %p1981_p5 = por %p148_p2, %p147_p0  ;;  %p1985_p6 = por %p154_p4, %p153_p3 }
   0xc   : > { %p1416_p7 = scmp.ge.s32.totalorder %s1903_s21, 1  ;;  %p161_p8 = scmp.lt.s32.totalorder %s1903_s21, 3 }
   0xd   : > { %s2212_s28 = scalar_select %p1981_p5, 1, 0 }
   0xe   : > { %s2213_s29 = scalar_select %p1985_p6, 1, 0 }
   0xf   : > { %p2209_p9 = scmp.eq.s32.totalorder %s1964_s22, 0  ;;  %p1992_p10 = pnand %p1416_p7, %p161_p8 }
  0x10   : > { %s1905_s6 = smov [#allocation2]   ;;  %s1906_s9 = smov [#allocation5]  }
  0x11   : > { %s2214_s30 = scalar_select %p1992_p10, 1, 0 }
  0x12   : > { %s173_s7 = sshll.u32 %s1905_s6, 4  ;;  %p1722_p11 = pneg %p1992_p10  ;;  %s174_s7 = int_to_ptr.vmem [resolvable:$true] %s173_s7 }
  0x13   : > { %s189_s10 = sshll.u32 %s1906_s9, 4  ;;  %s1777_s13 = scalar_lea.hbm %s2204_s1, 10752  ;;  %s2004_s10 = int_to_ptr.vmem [resolvable:$true] %s189_s10 }
  0x14   : > { %p2000_p12 = pnand %p2209_p9, %p1722_p11  ;;  %p1778_p13 = scmp.ne.s32.totalorder %s2204_s1, %s1777_s13 }
  0x15   : > { %p1784_p3 = scmp.lt.u32.totalorder %s1777_s13, %s2204_s1 }
  0x16   : > { %p1779_p0 = pneg %p2000_p12 }
  0x18   : > { %p1780_p1 = pnand %p1779_p0, %p1778_p13 }
  0x1a   : > { %p1781_p2 = pneg %p1780_p1 }
  0x1c   : > { %p1786_p4 = pnand %p1784_p3, %p1781_p2 }
  0x1e   : > { %1789 = shalt.err (!%p1786_p4)
}
  0x1f   : > { %s1790_s23 = scalar_lea.vmem %s174_s7, 10752  ;;  %p1798_p9 = scmp.lt.s32.totalorder %s174_s7, %s174_s7 }
  0x20   : > { %p1791_p7 = scmp.ne.s32.totalorder %s174_s7, %s1790_s23  ;;  %p1799_p6 = scmp.lt.s32.totalorder %s1790_s23, %s1790_s23 }
  0x22   : > { %p1793_p8 = pnand %p1791_p7, %p1779_p0  ;;  %p1800_p5 = por %p1799_p6, %p1798_p9 }
  0x24   : > { %p1794_p11 = pneg %p1793_p8 }
  0x26   : > { %p1801_p10 = pnand %p1800_p5, %p1794_p11 }
  0x28   : > { %1804 = shalt.err (!%p1801_p10)
}
  0x29   : > { %s1907_s25 = smov 512   ;;  %s1908_s26 = smov 32  }
  0x2a   : > { %1725 = dma.hbm_to_vmem [thread:$0]  (!%p2000_p12), %s2204_s1, 10752, %s174_s7, [#allocation3], %s1907_s25, %s1907_s25, %s1908_s26  }
  0x2b   : > { %s1805_s13 = scalar_lea.hbm %s2206_s3, 8192 }
  0x2c   : > { %p1806_p13 = scmp.ne.s32.totalorder %s2206_s3, %s1805_s13  ;;  %p1812_p9 = scmp.lt.u32.totalorder %s1805_s13, %s2206_s3 }
  0x2e   : > { %p1808_p5 = pnand %p1806_p13, %p1779_p0 }
  0x30   : > { %p1809_p6 = pneg %p1808_p5 }
  0x32   : > { %p1814_p10 = pnand %p1812_p9, %p1809_p6 }
  0x34   : > { %1817 = shalt.err (!%p1814_p10)
}
  0x35   : > { %s1818_s7 = scalar_lea.vmem %s2004_s10, 8192  ;;  %p1826_p4 = scmp.lt.s32.totalorder %s2004_s10, %s2004_s10 }
  0x36   : > { %p1819_p1 = scmp.ne.s32.totalorder %s2004_s10, %s1818_s7  ;;  %p1827_p7 = scmp.lt.s32.totalorder %s1818_s7, %s1818_s7 }
  0x38   : > { %p1821_p2 = pnand %p1819_p1, %p1779_p0  ;;  %p1828_p8 = por %p1827_p7, %p1826_p4 }
  0x3a   : > { %p1822_p3 = pneg %p1821_p2 }
  0x3c   : > { %p1829_p11 = pnand %p1828_p8, %p1822_p3 }
  0x3e   : > { %1832 = shalt.err (!%p1829_p11)
}
  0x3f   : > { %s1909_s23 = smov 128   ;;  %s1910_s25 = smov 8  }
  0x40   : > { %1728 = dma.hbm_to_vmem [thread:$0]  (!%p2000_p12), %s2206_s3, 8192, %s2004_s10, [#allocation6], %s1909_s23, %s1909_s23, %s1910_s25  }
  0x41   : > { %p2216_p13 = scmp.ne.s32.totalorder %s2214_s30, 0 }
  0x42   : > { %p2217_p0 = scmp.eq.s32.totalorder (!%p2216_p13), %s1964_s22, 0 }
  0x43   : > { %218 = sbr.rel (%p2216_p13) target bundleno = 606 (0x25e), region = 40 }
  0x4a   : > { %1878 = dma.done.wait (%p2217_p0), [#allocation3], 10752   ;;  %p2218_p5 = pmov %p2217_p0 }
  0x4b   : > { %p2219_p6 = pmov %p2217_p0 }
  0x4c   : > { %1880 = vsyncadd (%p2218_p5), [#allocation3], 4294956544 }
  0x4d   : > { %1882 = dma.done.wait (%p2219_p6), [#allocation6], 8192   ;;  %p2220_p9 = pmov %p2217_p0 }
  0x4e   : > { %v1911_v0 = vmov 0.0   ;;  %s1424_s30 = sshll.u32 %s1964_s22, 1  ;;  %v297_v1 = vld [vmem:[#allocation2 + $0xe8] sm:$0xff]  ;;  %v299_v3 = vld [vmem:[#allocation2 + $0xf8] sm:$0xff]  ;;  %v296_v6 = vld [vmem:[#allocation2 + $0xe0] sm:$0xff]  ;;  %vm337_vm0 = vcmask 1045504  }
  0x4f   : > { %1884 = vsyncadd (%p2220_p9), [#allocation6], 4294959104  ;;  %414 = vmatprep.mubr.f32.mxu0 %v1911_v0  ;;  %503 = vmatprep.mubr.f32.mxu1 %v1911_v0  ;;  %p2066_p12 = scmp.lt.s32.totalorder %s1424_s30, 3  ;;  %v301_v2 = vld [vmem:[#allocation2 + $0x108] sm:$0xff]  ;;  %v303_v5 = vld [vmem:[#allocation2 + $0x118] sm:$0xff]  ;;  %vm324_vm1 = vcmask 441344  }
  0x50   : > { %v1543_v4 = vpack.c.bf16 %v301_v2, %v297_v1  ;;  %v300_v7 = vld [vmem:[#allocation2 + $0x100] sm:$0xff]  ;;  %v1555_v8 = vpack.c.bf16 %v303_v5, %v299_v3  ;;  %v298_v10 = vld [vmem:[#allocation2 + $0xf0] sm:$0xff]  ;;  %v305_v12 = vld [vmem:[#allocation2 + $0x128] sm:$0xff]  ;;  %vm1170_vm2 = vcmask 1041409   ;;  %s248_s15 = sand.u32 1, %s1895_s19   ;;  %s1470_s23 = sshll.u32 %s1964_s22, 5 }
  0x51   : > { %v1545_v9 = vpack.c.bf16 %v300_v7, %v296_v6  ;;  %v302_v11 = vld [vmem:[#allocation2 + $0x110] sm:$0xff]  ;;  %v309_v14 = vld [vmem:[#allocation2 + $0x148] sm:$0xff]  ;;  %v307_v15 = vld [vmem:[#allocation2 + $0x138] sm:$0xff]  ;;  %s2229_s30 = smov (!%p2066_p12, %s1424_s30), 3  ;;  %s1423_s16 = sshll.u32 %s248_s15, 1 }
  0x52   : > { %1544 = vmatprep.subr.bf16.mxu0 %v1543_v4  ;;  %v1557_v13 = vpack.c.bf16 %v302_v11, %v298_v10  ;;  %v311_v16 = vld [vmem:[#allocation2 + $0x158] sm:$0xff]  ;;  %1556 = vmatprep.subr.bf16.mxu1 %v1555_v8  ;;  %v1547_v17 = vpack.c.bf16 %v309_v14, %v305_v12  ;;  %v304_v19 = vld [vmem:[#allocation2 + $0x120] sm:$0xff]  ;;  %v306_v21 = vld [vmem:[#allocation2 + $0x130] sm:$0xff]  ;;  %s1711_s10 = smul.u32 24, %s2229_s30  ;;  %s250_s25 = scalar_lea.vmem [#allocation7], %s1423_s16 }
  0x53   : > { %1546 = vmatpush1.bf16.msra.mxu0 %v1545_v9  ;;  %v1559_v18 = vpack.c.bf16 %v311_v16, %v307_v15  ;;  %v308_v20 = vld [vmem:[#allocation2 + $0x140] sm:$0xff]  ;;  %v310_v23 = vld [vmem:[#allocation2 + $0x150] sm:$0xff]  ;;  %v313_v24 = vld [vmem:[#allocation2 + $0x168] sm:$0xff]  ;;  %s1334_s26 = sshll.u32 %s250_s25, 4  ;;  %s2161_s8 = scalar_lea.hbm %s2208_s5, %s1470_s23  ;;  %s2163_s26 = int_to_ptr.vmem [resolvable:$true] %s1334_s26 }
  0x54   : > { %1558 = vmatpush1.bf16.msra.mxu1 %v1557_v13  ;;  %v1549_v22 = vpack.c.bf16 %v308_v20, %v304_v19  ;;  %v317_v25 = vld [vmem:[#allocation2 + $0x188] sm:$0xff]  ;;  %1548 = vmatprep.subr.bf16.mxu0 %v1547_v17  ;;  %v1561_v26 = vpack.c.bf16 %v310_v23, %v306_v21  ;;  %v315_v28 = vld [vmem:[#allocation2 + $0x178] sm:$0xff]  ;;  %v312_v30 = vld [vmem:[#allocation2 + $0x160] sm:$0xff]  ;;  %s2078_s12 = scalar_lea.vmem %s2203_s0, %s1711_s10  ;;  %s1321_s10 = scalar_lea.sflag [#allocation4], %s248_s15 }
  0x55   : > { %1560 = vmatprep.subr.bf16.mxu1 %v1559_v18  ;;  %v1551_v27 = vpack.c.bf16 %v317_v25, %v313_v24  ;;  %v319_v29 = vld [vmem:[#allocation2 + $0x198] sm:$0xff]  ;;  %v316_v32 = vld [vmem:[#allocation2 + $0x180] sm:$0xff]  ;;  %v314_v33 = vld [vmem:[#allocation2 + $0x170] sm:$0xff]  ;;  %s1833_s9 = scalar_lea.vmem %s2163_s26, 32  ;;  %p2222_p1 = scmp.ne.s32.totalorder %s2212_s28, 0 }
  0x56   : > { %v1563_v31 = vpack.c.bf16 %v319_v29, %v315_v28  ;;  %v318_v34 = vld [vmem:[#allocation2 + $0x190] sm:$0xff]  ;;  %v1553_v35 = vpack.c.bf16 %v316_v32, %v312_v30  ;;  %v321_v37 = vld [vmem:[#allocation2 + $0x1a8] sm:$0x3f]  ;;  %v323_v38 = vld [vmem:[#allocation2 + $0x1b8] sm:$0x3f]  ;;  %p1834_p10 = scmp.ne.s32.totalorder %s2163_s26, %s1833_s9  ;;  %s1912_s22 = smov [#allocation7]  }
  0x57   : > { %1550 = vmatpush1.bf16.msra.mxu0 %v1549_v22  ;;  %v1565_v36 = vpack.c.bf16 %v318_v34, %v314_v33  ;;  %v264_v39 = vld [vmem:[#allocation2 + $0x8] sm:$0xff]  ;;  %v263_v41 = vld [vmem:[#allocation2] sm:$0xff]  ;;  %v266_v43 = vld [vmem:[#allocation2 + $0x18] sm:$0xff]  ;;  %s1837_s11 = sshll.u32 %s1912_s22, 4  ;;  %s1838_s11 = int_to_ptr.vmem [resolvable:$false] %s1837_s11 }
  0x58   : > { %1562 = vmatpush1.bf16.msra.mxu1 %v1561_v26  ;;  %1552 = vmatprep.subr.bf16.mxu0 %v1551_v27  ;;  %v268_v40 = vld [vmem:[#allocation2 + $0x28] sm:$0xff]  ;;  %v267_v42 = vld [vmem:[#allocation2 + $0x20] sm:$0xff]  ;;  %v270_v44 = vld [vmem:[#allocation2 + $0x38] sm:$0xff]  ;;  %p1835_p2 = pnand %p1834_p10, %p2222_p1  ;;  %p1840_p4 = scmp.lt.s32.totalorder %s2163_s26, %s1838_s11 }
  0x59   : > { %1564 = vmatprep.subr.bf16.mxu1 %v1563_v31  ;;  %v320_v45 = vld [vmem:[#allocation2 + $0x1a0] sm:$0x3f]  ;;  %v322_v46 = vld [vmem:[#allocation2 + $0x1b0] sm:$0x3f]  ;;  %v1567_v48 = vpack.c.bf16 %v268_v40, %v264_v39  ;;  %v1569_v51 = vpack.c.bf16 %v267_v42, %v263_v41  ;;  %v1579_v52 = vpack.c.bf16 %v270_v44, %v266_v43  ;;  %v272_v53 = vld [vmem:[#allocation2 + $0x48] sm:$0xff] }
  0x5a   : > { %v291_v47 = vld [vmem:[%s2078_s12 + $0x1] sm:$0xff]  ;;  %v265_v49 = vld [vmem:[#allocation2 + $0x10] sm:$0xff]  ;;  %v274_v57 = vld [vmem:[#allocation2 + $0x58] sm:$0xff]  ;;  %p1836_p3 = pneg %p1835_p2 }
  0x5b   : > { %1554 = vmatpush1.bf16.msra.mxu0 %v1553_v35  ;;  %v269_v50 = vld [vmem:[#allocation2 + $0x30] sm:$0xff]  ;;  %v276_v54 = vld [vmem:[#allocation2 + $0x68] sm:$0xff]  ;;  %v271_v55 = vld [vmem:[#allocation2 + $0x40] sm:$0xff] }
  0x5c   : > { %1566 = vmatpush1.bf16.msra.mxu1 %v1565_v36  ;;  %1430 = vmatprep.subr.msk.mxu0 %vm337_vm0, %v321_v37  ;;  %v275_v56 = vld [vmem:[#allocation2 + $0x60] sm:$0xff]  ;;  %v278_v58 = vld [vmem:[#allocation2 + $0x78] sm:$0xff]  ;;  %v1581_v59 = vpack.c.bf16 %v269_v50, %v265_v49  ;;  %v292_v60 = vld [vmem:[%s2078_s12 + $0x9] sm:$0xff]  ;;  %v1571_v61 = vpack.c.bf16 %v276_v54, %v272_v53 }
  0x5d   : > { %1436 = vmatprep.subr.msk.mxu1 %vm337_vm0, %v323_v38  ;;  %v273_v62 = vld [vmem:[#allocation2 + $0x50] sm:$0xff]  ;;  %v1573_v1 = vpack.c.bf16 %v275_v56, %v271_v55  ;;  %v1583_v2 = vpack.c.bf16 %v278_v58, %v274_v57  ;;  %v280_v3 = vld [vmem:[#allocation2 + $0x88] sm:$0xff]  ;;  %v279_v5 = vld [vmem:[#allocation2 + $0x80] sm:$0xff] }
  0x5e   : > { %v277_v63 = vld [vmem:[#allocation2 + $0x70] sm:$0xff]  ;;  %v284_v4 = vld [vmem:[#allocation2 + $0xa8] sm:$0xff]  ;;  %v283_v6 = vld [vmem:[#allocation2 + $0xa0] sm:$0xff] }
  0x5f   : > { %1431 = vmatpush1.msk.msra.mxu0 %vm337_vm0, %v320_v45  ;;  %v282_v7 = vld [vmem:[#allocation2 + $0x98] sm:$0xff]  ;;  %v1585_v9 = vpack.c.bf16 %v277_v63, %v273_v62  ;;  %v1575_v11 = vpack.c.bf16 %v284_v4, %v280_v3  ;;  %v281_v12 = vld [vmem:[#allocation2 + $0x90] sm:$0xff]  ;;  %v1577_v14 = vpack.c.bf16 %v283_v6, %v279_v5  ;;  %v1429_v17 = vld [vmem:[%s2078_s12 + $0x21] sm:$0xff] }
  0x60   : > { %1437 = vmatpush1.msk.msra.mxu1 %vm337_vm0, %v322_v46  ;;  %1432 = vmatmul.mubr.msk.f32.vlgmr.msra.gmra.mrb[0].mxu0 %vm324_vm1, %v291_v47  ;;  %v286_v8 = vld [vmem:[#allocation2 + $0xb8] sm:$0xff]  ;;  %v285_v13 = vld [vmem:[#allocation2 + $0xb0] sm:$0xff]  ;;  %v288_v18 = vld [vmem:[#allocation2 + $0xc8] sm:$0x3f] }
  0x61   : > { %1438 = vmatmul.mubr.msk.f32.vlgmr.msra.gmra.mrb[0].mxu1 %vm324_vm1, %v291_v47  ;;  %1568 = vmatprep.subr.bf16.mxu0 %v1567_v48  ;;  %v1428_v10 = vld [vmem:[%s2078_s12 + $0x19] sm:$0xff]  ;;  %v1587_v15 = vpack.c.bf16 %v286_v8, %v282_v7  ;;  %v1589_v16 = vpack.c.bf16 %v285_v13, %v281_v12  ;;  %v736_v21 = vld [vmem:[#allocation2 + $0x1c8] sm:$0xff]  ;;  %v289_v27 = vld [vmem:[#allocation2 + $0xd0] sm:$0x3f] }
  0x62   : > { %1570 = vmatpush1.bf16.msra.mxu0 %v1569_v51  ;;  %1580 = vmatprep.subr.bf16.mxu1 %v1579_v52  ;;  %v287_v19 = vld [vmem:[#allocation2 + $0xc0] sm:$0x3f]  ;;  %v290_v20 = vld [vmem:[#allocation2 + $0xd8] sm:$0x3f]  ;;  %v740_v22 = vld [vmem:[#allocation2 + $0x1e8] sm:$0xff] }
  0x63   : > { %420 = vmatprep.mubr.f32.mxu0 %v1911_v0  ;;  %509 = vmatprep.mubr.f32.mxu1 %v1911_v0  ;;  %v735_v23 = vld [vmem:[#allocation2 + $0x1c0] sm:$0xff]  ;;  %v738_v25 = vld [vmem:[#allocation2 + $0x1d8] sm:$0xff]  ;;  %v1591_v29 = vpack.c.bf16 %v740_v22, %v736_v21  ;;  %v737_v30 = vld [vmem:[#allocation2 + $0x1d0] sm:$0xff] }
  0x64   : > { %1582 = vmatpush1.bf16.msra.mxu1 %v1581_v59  ;;  %1433 = vmatmul.mubr.msk.f32.gmra.mrb[2].mxu0 %vm324_vm1, %v292_v60  ;;  %v739_v24 = vld [vmem:[#allocation2 + $0x1e0] sm:$0xff]  ;;  %v742_v26 = vld [vmem:[#allocation2 + $0x1f8] sm:$0xff]  ;;  %v741_v31 = vld [vmem:[#allocation2 + $0x1f0] sm:$0xff] }
  0x65   : > { %1439 = vmatmul.mubr.msk.f32.gmra.mrb[2].mxu1 %vm324_vm1, %v292_v60  ;;  %1572 = vmatprep.subr.bf16.mxu0 %v1571_v61  ;;  %v258_v28 = vld [vmem:[%s2078_s12] sm:$0xff]  ;;  %v1593_v32 = vpack.c.bf16 %v739_v24, %v735_v23  ;;  %v1603_v33 = vpack.c.bf16 %v742_v26, %v738_v25  ;;  %v744_v34 = vld [vmem:[#allocation2 + $0x208] sm:$0xff]  ;;  %v746_v38 = vld [vmem:[#allocation2 + $0x218] sm:$0xff]  ;;  %v1605_v40 = vpack.c.bf16 %v741_v31, %v737_v30 }
  0x66   : > { %1574 = vmatpush1.bf16.msra.mxu0 %v1573_v1  ;;  %1584 = vmatprep.subr.bf16.mxu1 %v1583_v2  ;;  %v748_v35 = vld [vmem:[#allocation2 + $0x228] sm:$0xff]  ;;  %v743_v36 = vld [vmem:[#allocation2 + $0x200] sm:$0xff]  ;;  %v750_v39 = vld [vmem:[#allocation2 + $0x238] sm:$0xff] }
  0x67   : > { %426 = vmatprep.mubr.f32.mxu0 %v1911_v0  ;;  %515 = vmatprep.mubr.f32.mxu1 %v1911_v0  ;;  %v747_v37 = vld [vmem:[#allocation2 + $0x220] sm:$0xff]  ;;  %v259_v41 = vld [vmem:[%s2078_s12 + $0x8] sm:$0xff]  ;;  %v1595_v42 = vpack.c.bf16 %v748_v35, %v744_v34  ;;  %v745_v43 = vld [vmem:[#allocation2 + $0x210] sm:$0xff]  ;;  %v1607_v46 = vpack.c.bf16 %v750_v39, %v746_v38 }
  0x68   : > { %1586 = vmatpush1.bf16.msra.mxu1 %v1585_v9  ;;  %1434 = vmatmul.mubr.msk.f32.gmra.mrb[4].mxu0 %vm324_vm1, %v1428_v10  ;;  %v749_v44 = vld [vmem:[#allocation2 + $0x230] sm:$0xff]  ;;  %v1597_v45 = vpack.c.bf16 %v747_v37, %v743_v36  ;;  %v752_v47 = vld [vmem:[#allocation2 + $0x248] sm:$0xff]  ;;  %v751_v49 = vld [vmem:[#allocation2 + $0x240] sm:$0xff] }
  0x69   : > { %1440 = vmatmul.mubr.msk.f32.gmra.mrb[4].mxu1 %vm324_vm1, %v1428_v10  ;;  %1576 = vmatprep.subr.bf16.mxu0 %v1575_v11  ;;  %v756_v48 = vld [vmem:[#allocation2 + $0x268] sm:$0xff]  ;;  %v755_v50 = vld [vmem:[#allocation2 + $0x260] sm:$0xff]  ;;  %v754_v51 = vld [vmem:[#allocation2 + $0x258] sm:$0xff]  ;;  %v1609_v53 = vpack.c.bf16 %v749_v44, %v745_v43 }
  0x6a   : > { %1578 = vmatpush1.bf16.msra.mxu0 %v1577_v14  ;;  %1588 = vmatprep.subr.bf16.mxu1 %v1587_v15  ;;  %v758_v52 = vld [vmem:[#allocation2 + $0x278] sm:$0xff]  ;;  %v1599_v55 = vpack.c.bf16 %v756_v48, %v752_v47  ;;  %v753_v56 = vld [vmem:[#allocation2 + $0x250] sm:$0xff]  ;;  %v1601_v58 = vpack.c.bf16 %v755_v50, %v751_v49  ;;  %v1427_v61 = vld [vmem:[%s2078_s12 + $0x20] sm:$0xff] }
  0x6b   : > { %432 = vmatprep.mubr.f32.mxu0 %v1911_v0  ;;  %521 = vmatprep.mubr.f32.mxu1 %v1911_v0  ;;  %v1426_v54 = vld [vmem:[%s2078_s12 + $0x18] sm:$0xff]  ;;  %v757_v57 = vld [vmem:[#allocation2 + $0x270] sm:$0xff]  ;;  %v1611_v59 = vpack.c.bf16 %v758_v52, %v754_v51  ;;  %v760_v62 = vld [vmem:[#allocation2 + $0x288] sm:$0x3f] }
  0x6c   : > { %1590 = vmatpush1.bf16.msra.mxu1 %v1589_v16  ;;  %1435 = vmatmul.mubr.msk.f32.gmra.mrb[6].mxu0 %vm324_vm1, %v1429_v17  ;;  %v1613_v60 = vpack.c.bf16 %v757_v57, %v753_v56  ;;  %v759_v63 = vld [vmem:[#allocation2 + $0x280] sm:$0x3f]  ;;  %v762_v1 = vld [vmem:[#allocation2 + $0x298] sm:$0x3f]  ;;  %v761_v2 = vld [vmem:[#allocation2 + $0x290] sm:$0x3f] }
  0x6d   : > { %1441 = vmatmul.mubr.msk.f32.gmra.mrb[6].mxu1 %vm324_vm1, %v1429_v17  ;;  %1442 = vmatprep.subr.msk.mxu0 %vm337_vm0, %v288_v18  ;;  %v730_v3 = vld [vmem:[%s2078_s12 + $0x2] sm:$0xff]  ;;  %v731_v4 = vld [vmem:[%s2078_s12 + $0xa] sm:$0xff]  ;;  %v1454_v5 = vld [vmem:[%s2078_s12 + $0x1a] sm:$0xff] }
  0x6e   : > { %1443 = vmatpush1.msk.msra.mxu0 %vm337_vm0, %v287_v19  ;;  %1448 = vmatprep.subr.msk.mxu1 %vm337_vm0, %v290_v20  ;;  %v1455_v6 = vld [vmem:[%s2078_s12 + $0x22] sm:$0xff]  ;;  %v1110_v19 = vld [vmem:[#allocation5 + $0x98] sm:$0xff]  ;;  %v1141_v20 = vld [vmem:[#allocation5 + $0x190] sm:$0xff]  ;;  %s1839_s12 = scalar_lea.vmem %s1838_s11, 64 }
  0x6f   : > { %616 = vmatprep.mubr.f32.mxu0 %v1911_v0  ;;  %705 = vmatprep.mubr.f32.mxu1 %v1911_v0  ;;  %v1107_v7 = vld [vmem:[#allocation5 + $0x80] sm:$0xff]  ;;  %v1108_v8 = vld [vmem:[#allocation5 + $0x88] sm:$0xff]  ;;  %v1142_v22 = vld [vmem:[#allocation5 + $0x198] sm:$0xff]  ;;  %p1841_p7 = scmp.lt.s32.totalorder %s1839_s12, %s1833_s9 }
  0x70   : > { %1449 = vmatpush1.msk.msra.mxu1 %vm337_vm0, %v289_v27  ;;  %1444 = vmatmul.mubr.msk.f32.vlgmr.msra.gmra.mrb[0].mxu0 %vm324_vm1, %v258_v28  ;;  %v1139_v9 = vld [vmem:[#allocation5 + $0x180] sm:$0xff]  ;;  %v1615_v10 = vpack.c.bf16 %v1108_v8, %v1107_v7  ;;  %v1140_v11 = vld [vmem:[#allocation5 + $0x188] sm:$0xff]  ;;  %v1093_v23 = vld [vmem:[#allocation5 + $0x10] sm:$0xff]  ;;  %v1651_v25 = vpack.c.bf16 %v1142_v22, %v1141_v20 }
  0x71   : > { %1450 = vmatmul.mubr.msk.f32.vlgmr.msra.gmra.mrb[0].mxu1 %vm324_vm1, %v258_v28  ;;  %1592 = vmatprep.subr.bf16.mxu0 %v1591_v29  ;;  %v1091_v12 = vld [vmem:[#allocation5] sm:$0xff]  ;;  %v1092_v13 = vld [vmem:[#allocation5 + $0x8] sm:$0xff]  ;;  %v1647_v14 = vpack.c.bf16 %v1140_v11, %v1139_v9  ;;  %v1094_v24 = vld [vmem:[#allocation5 + $0x18] sm:$0xff]  ;;  %p1842_p8 = por %p1841_p7, %p1840_p4 }
  0x72   : > { %1594 = vmatpush1.bf16.msra.mxu0 %v1593_v32  ;;  %1604 = vmatprep.subr.bf16.mxu1 %v1603_v33  ;;  %v1617_v15 = vpack.c.bf16 %v1092_v13, %v1091_v12  ;;  %v1123_v16 = vld [vmem:[#allocation5 + $0x100] sm:$0xff]  ;;  %v1124_v17 = vld [vmem:[#allocation5 + $0x108] sm:$0xff]  ;;  %v1621_v26 = vpack.c.bf16 %v1094_v24, %v1093_v23  ;;  %v1125_v27 = vld [vmem:[#allocation5 + $0x110] sm:$0xff] }
  0x73   : > { %622 = vmatprep.mubr.f32.mxu0 %v1911_v0  ;;  %711 = vmatprep.mubr.f32.mxu1 %v1911_v0  ;;  %v1649_v18 = vpack.c.bf16 %v1124_v17, %v1123_v16  ;;  %v1126_v28 = vld [vmem:[#allocation5 + $0x118] sm:$0xff]  ;;  %v1111_v30 = vld [vmem:[#allocation5 + $0xa0] sm:$0xff]  ;;  %v1112_v31 = vld [vmem:[#allocation5 + $0xa8] sm:$0xff]  ;;  %p1843_p11 = pnand %p1842_p8, %p1836_p3 }
  0x74   : > { %1606 = vmatpush1.bf16.msra.mxu1 %v1605_v40  ;;  %1445 = vmatmul.mubr.msk.f32.gmra.mrb[2].mxu0 %vm324_vm1, %v259_v41  ;;  %v1653_v29 = vpack.c.bf16 %v1126_v28, %v1125_v27  ;;  %v1143_v32 = vld [vmem:[#allocation5 + $0x1a0] sm:$0xff]  ;;  %v1623_v33 = vpack.c.bf16 %v1112_v31, %v1111_v30  ;;  %v1144_v34 = vld [vmem:[#allocation5 + $0x1a8] sm:$0xff]  ;;  %v1114_v43 = vld [vmem:[#allocation5 + $0xb8] sm:$0xff] }
  0x75   : > { %1451 = vmatmul.mubr.msk.f32.gmra.mrb[2].mxu1 %vm324_vm1, %v259_v41  ;;  %1596 = vmatprep.subr.bf16.mxu0 %v1595_v42  ;;  %v1095_v35 = vld [vmem:[#allocation5 + $0x20] sm:$0xff]  ;;  %v1096_v36 = vld [vmem:[#allocation5 + $0x28] sm:$0xff]  ;;  %v1655_v37 = vpack.c.bf16 %v1144_v34, %v1143_v32  ;;  %v1113_v42 = vld [vmem:[#allocation5 + $0xb0] sm:$0xff] }
  0x76   : > { %1598 = vmatpush1.bf16.msra.mxu0 %v1597_v45  ;;  %1608 = vmatprep.subr.bf16.mxu1 %v1607_v46  ;;  %v1625_v38 = vpack.c.bf16 %v1096_v36, %v1095_v35  ;;  %v1127_v39 = vld [vmem:[#allocation5 + $0x120] sm:$0xff]  ;;  %v1128_v40 = vld [vmem:[#allocation5 + $0x128] sm:$0xff]  ;;  %v1145_v44 = vld [vmem:[#allocation5 + $0x1b0] sm:$0xff]  ;;  %v1627_v45 = vpack.c.bf16 %v1114_v43, %v1113_v42 }
  0x77   : > { %628 = vmatprep.mubr.f32.mxu0 %v1911_v0  ;;  %717 = vmatprep.mubr.f32.mxu1 %v1911_v0  ;;  %v1657_v41 = vpack.c.bf16 %v1128_v40, %v1127_v39  ;;  %v1146_v46 = vld [vmem:[#allocation5 + $0x1b8] sm:$0xff]  ;;  %v1097_v47 = vld [vmem:[#allocation5 + $0x30] sm:$0xff]  ;;  %v1147_v56 = vld [vmem:[#allocation5 + $0x1c0] sm:$0xff] }
  0x78   : > { %1610 = vmatpush1.bf16.msra.mxu1 %v1609_v53  ;;  %1446 = vmatmul.mubr.msk.f32.gmra.mrb[4].mxu0 %vm324_vm1, %v1426_v54  ;;  %v1098_v48 = vld [vmem:[#allocation5 + $0x38] sm:$0xff]  ;;  %v1659_v49 = vpack.c.bf16 %v1146_v46, %v1145_v44  ;;  %v1129_v51 = vld [vmem:[#allocation5 + $0x130] sm:$0xff]  ;;  %v1120_v16 = vld [vmem:[#allocation5 + $0xe8] sm:$0xff] }
  0x79   : > { %1452 = vmatmul.mubr.msk.f32.gmra.mrb[4].mxu1 %vm324_vm1, %v1426_v54  ;;  %1600 = vmatprep.subr.bf16.mxu0 %v1599_v55  ;;  %v1629_v50 = vpack.c.bf16 %v1098_v48, %v1097_v47  ;;  %v1130_v52 = vld [vmem:[#allocation5 + $0x138] sm:$0xff]  ;;  %v1115_v54 = vld [vmem:[#allocation5 + $0xc0] sm:$0xff]  ;;  %v1116_v55 = vld [vmem:[#allocation5 + $0xc8] sm:$0xff] }
  0x7a   : > { %1602 = vmatpush1.bf16.msra.mxu0 %v1601_v58  ;;  %1612 = vmatprep.subr.bf16.mxu1 %v1611_v59  ;;  %v1661_v53 = vpack.c.bf16 %v1130_v52, %v1129_v51  ;;  %v1631_v57 = vpack.c.bf16 %v1116_v55, %v1115_v54  ;;  %v1148_v58 = vld [vmem:[#allocation5 + $0x1c8] sm:$0xff]  ;;  %v1099_v59 = vld [vmem:[#allocation5 + $0x40] sm:$0xff]  ;;  %v1150_v7 = vld [vmem:[#allocation5 + $0x1d8] sm:$0xff] }
  0x7b   : > { %634 = vmatprep.mubr.f32.mxu0 %v1911_v0  ;;  %723 = vmatprep.mubr.f32.mxu1 %v1911_v0  ;;  %v1101_v8 = vld [vmem:[#allocation5 + $0x50] sm:$0xff]  ;;  %v1102_v9 = vld [vmem:[#allocation5 + $0x58] sm:$0xff]  ;;  %v1151_v17 = vld [vmem:[#allocation5 + $0x1e0] sm:$0xff] }
  0x7c   : > { %1614 = vmatpush1.bf16.msra.mxu1 %v1613_v60  ;;  %1447 = vmatmul.mubr.msk.f32.gmra.mrb[6].mxu0 %vm324_vm1, %v1427_v61  ;;  %v1100_v60 = vld [vmem:[#allocation5 + $0x48] sm:$0xff]  ;;  %v1637_v11 = vpack.c.bf16 %v1102_v9, %v1101_v8  ;;  %v1133_v12 = vld [vmem:[#allocation5 + $0x150] sm:$0xff]  ;;  %v1134_v13 = vld [vmem:[#allocation5 + $0x158] sm:$0xff] }
  0x7d   : > { %1453 = vmatmul.mubr.msk.f32.gmra.mrb[6].mxu1 %vm324_vm1, %v1427_v61  ;;  %1456 = vmatprep.subr.msk.mxu0 %vm337_vm0, %v760_v62  ;;  %v1663_v61 = vpack.c.bf16 %v1148_v58, %v1147_v56  ;;  %v1633_v62 = vpack.c.bf16 %v1100_v60, %v1099_v59  ;;  %v1104_v20 = vld [vmem:[#allocation5 + $0x68] sm:$0xff]  ;;  %v1135_v23 = vld [vmem:[#allocation5 + $0x160] sm:$0xff]  ;;  %v1122_v27 = vld [vmem:[#allocation5 + $0xf8] sm:$0xff] }
  0x7e   : > { %1457 = vmatpush1.msk.msra.mxu0 %vm337_vm0, %v759_v63  ;;  %1462 = vmatprep.subr.msk.mxu1 %vm337_vm0, %v762_v1  ;;  %v1131_v63 = vld [vmem:[#allocation5 + $0x140] sm:$0xff]  ;;  %v1132_v1 = vld [vmem:[#allocation5 + $0x148] sm:$0xff]  ;;  %v1153_v28 = vld [vmem:[#allocation5 + $0x1f0] sm:$0xff] }
  0x7f   : > { %851 = vmatprep.mubr.f32.mxu0 %v1911_v0  ;;  %940 = vmatprep.mubr.f32.mxu1 %v1911_v0  ;;  %v1136_v24 = vld [vmem:[#allocation5 + $0x168] sm:$0xff]  ;;  %v1154_v30 = vld [vmem:[#allocation5 + $0x1f8] sm:$0xff]  ;;  %v1105_v31 = vld [vmem:[#allocation5 + $0x70] sm:$0xff] }
  0x80   : > { %1463 = vmatpush1.msk.msra.mxu1 %vm337_vm0, %v761_v2  ;;  %1458 = vmatmul.mubr.msk.f32.vlgmr.msra.gmra.mrb[0].mxu0 %vm324_vm1, %v730_v3  ;;  %v1665_v2 = vpack.c.bf16 %v1132_v1, %v1131_v63  ;;  %v1106_v32 = vld [vmem:[#allocation5 + $0x78] sm:$0xff]  ;;  %v1137_v35 = vld [vmem:[#allocation5 + $0x170] sm:$0xff] }
  0x81   : > { %1464 = vmatmul.mubr.msk.f32.vlgmr.msra.gmra.mrb[0].mxu1 %vm324_vm1, %v730_v3  ;;  %857 = vmatprep.mubr.f32.mxu0 %v1911_v0  ;;  %v1117_v3 = vld [vmem:[#allocation5 + $0xd0] sm:$0xff]  ;;  %v1645_v34 = vpack.c.bf16 %v1106_v32, %v1105_v31  ;;  %v1138_v36 = vld [vmem:[#allocation5 + $0x178] sm:$0xff] }
  0x82   : > { %946 = vmatprep.mubr.f32.mxu1 %v1911_v0  ;;  %1616 = vmatprep.subr.bf16.mxu0 %v1615_v10 }
  0x83   : > { %1648 = vmatprep.subr.bf16.mxu1 %v1647_v14  ;;  %1618 = vmatpush3.bf16.msra.mxu0 %v1617_v15  ;;  %v1669_v14 = vpack.c.bf16 %v1134_v13, %v1133_v12  ;;  %v1119_v15 = vld [vmem:[#allocation5 + $0xe0] sm:$0xff] }
  0x84   : > { %1459 = vmatmul.mubr.msk.f32.gmra.mrb[2].mxu0 %vm324_vm1, %v731_v4  ;;  %1650 = vmatpush3.bf16.msra.mxu1 %v1649_v18  ;;  %v1639_v18 = vpack.c.bf16 %v1120_v16, %v1119_v15 }
  0x85   : > { %1465 = vmatmul.mubr.msk.f32.gmra.mrb[2].mxu1 %vm324_vm1, %v731_v4  ;;  %863 = vmatprep.mubr.f32.mxu0 %v1911_v0  ;;  %v1118_v4 = vld [vmem:[#allocation5 + $0xd8] sm:$0xff] }
  0x86   : > { %952 = vmatprep.mubr.f32.mxu1 %v1911_v0  ;;  %1652 = vmatprep.subr.bf16.mxu1 %v1651_v25  ;;  %v1673_v25 = vpack.c.bf16 %v1136_v24, %v1135_v23 }
  0x88   : > { %1460 = vmatmul.mubr.msk.f32.gmra.mrb[4].mxu0 %vm324_vm1, %v1454_v5  ;;  %1654 = vmatpush3.bf16.msra.mxu1 %v1653_v29 }
  0x89   : > { %1466 = vmatmul.mubr.msk.f32.gmra.mrb[4].mxu1 %vm324_vm1, %v1454_v5  ;;  %869 = vmatprep.mubr.f32.mxu0 %v1911_v0  ;;  %v1149_v5 = vld [vmem:[#allocation5 + $0x1d0] sm:$0xff] }
  0x8a   : > { %958 = vmatprep.mubr.f32.mxu1 %v1911_v0  ;;  %v1109_v0 = vld [vmem:[#allocation5 + $0x90] sm:$0xff]  ;;  %1656 = vmatprep.subr.bf16.mxu1 %v1655_v37  ;;  %v1667_v10 = vpack.c.bf16 %v1150_v7, %v1149_v5  ;;  %v1677_v37 = vpack.c.bf16 %v1138_v36, %v1137_v35 }
  0x8b   : > { %v1619_v21 = vpack.c.bf16 %v1110_v19, %v1109_v0  ;;  %v1152_v0 = vld [vmem:[#allocation5 + $0x1e8] sm:$0xff]  ;;  %v1103_v19 = vld [vmem:[#allocation5 + $0x60] sm:$0xff] }
  0x8c   : > { %1461 = vmatmul.mubr.msk.f32.gmra.mrb[6].mxu0 %vm324_vm1, %v1455_v6  ;;  %1658 = vmatpush3.bf16.msra.mxu1 %v1657_v41  ;;  %v1641_v22 = vpack.c.bf16 %v1104_v20, %v1103_v19  ;;  %v981_v41 = vld [vmem:[%s2205_s2] sm:$0xf] }
  0x8d   : > { %1467 = vmatmul.mubr.msk.f32.gmra.mrb[6].mxu1 %vm324_vm1, %v1455_v6  ;;  %1620 = vmatprep.subr.bf16.mxu0 %v1619_v21  ;;  %v1635_v6 = vpack.c.bf16 %v1118_v4, %v1117_v3  ;;  %v1671_v21 = vpack.c.bf16 %v1152_v0, %v1151_v17 }
  0x8e   : > { %1622 = vmatpush3.bf16.msra.mxu0 %v1621_v26  ;;  %1660 = vmatprep.subr.bf16.mxu1 %v1659_v49  ;;  %v1121_v26 = vld [vmem:[#allocation5 + $0xf0] sm:$0xff] }
  0x8f   : > { %1624 = vmatprep.subr.bf16.mxu0 %v1623_v33  ;;  %v1643_v29 = vpack.c.bf16 %v1122_v27, %v1121_v26  ;;  %v1675_v33 = vpack.c.bf16 %v1154_v30, %v1153_v28 }
  0x90   : > { %1662 = vmatpush3.bf16.msra.mxu1 %v1661_v53 }
  0x91   : > { %1664 = vmatprep.subr.bf16.mxu1 %v1663_v61 }
  0x92   : > { %1626 = vmatpush3.bf16.msra.mxu0 %v1625_v38  ;;  %v983_v38 = vlaneseq }
  0x93   : > { %1628 = vmatprep.subr.bf16.mxu0 %v1627_v45 }
  0x94   : > { %1666 = vmatpush3.bf16.msra.mxu1 %v1665_v2  ;;  %v984_v39 = vshrl.u32 %v983_v38, 7 }
  0x95   : > { %1668 = vmatprep.subr.bf16.mxu1 %v1667_v10 }
  0x96   : > { %1630 = vmatpush3.bf16.msra.mxu0 %v1629_v50  ;;  %v985_v40 = vsub.s32 0, %v984_v39  ;;  %v993_v42 = vsub.s32 2, %v984_v39  ;;  %v989_v43 = vsub.s32 1, %v984_v39  ;;  %v997_v44 = vsub.s32 3, %v984_v39 }
  0x97   : > { %1632 = vmatprep.subr.bf16.mxu0 %v1631_v57 }
  0x98   : > { %1670 = vmatpush3.bf16.msra.mxu1 %v1669_v14  ;;  %v986_v45 = vrot.slane %v981_v41, %v985_v40  ;;  %v994_v47 = vrot.slane %v981_v41, %v993_v42  ;;  %v990_v48 = vrot.slane %v981_v41, %v989_v43  ;;  %v998_v51 = vrot.slane %v981_v41, %v997_v44 }
  0x99   : > { %1672 = vmatprep.subr.bf16.mxu1 %v1671_v21 }
  0x9a   : > { %1634 = vmatpush3.bf16.msra.mxu0 %v1633_v62 }
  0x9b   : > { %1636 = vmatprep.subr.bf16.mxu0 %v1635_v6 }
  0x9c   : > { %1674 = vmatpush3.bf16.msra.mxu1 %v1673_v25 }
  0x9d   : > { %1676 = vmatprep.subr.bf16.mxu1 %v1675_v33 }
  0x9e   : > { %1638 = vmatpush3.bf16.msra.mxu0 %v1637_v11 }
  0x9f   : > { %1640 = vmatprep.subr.bf16.mxu0 %v1639_v18 }
  0xa0   : > { %1678 = vmatpush3.bf16.msra.mxu1 %v1677_v37 }
  0xa2   : > { %1642 = vmatpush3.bf16.msra.mxu0 %v1641_v22 }
  0xa3   : > { %1644 = vmatprep.subr.bf16.mxu0 %v1643_v29 }
  0xa6   : > { %1646 = vmatpush3.bf16.msra.mxu0 %v1645_v34 }
 0x153   : > { %v853_v46 = vpop.f32.mrb[0].mxu0 }
 0x154   : > { %v942_v49 = vpop.f32.mrb[0].mxu1  ;;  %v855_v50 = vpop.f32.mrb[1].mxu0  ;;  %v1003_v53 = vadd.f32 %v986_v45, %v853_v46 }
 0x155   : > { %v944_v52 = vpop.f32.mrb[1].mxu1  ;;  %v1005_v54 = vadd.f32 %v994_v47, %v942_v49  ;;  %v1004_v55 = vadd.f32 %v990_v48, %v855_v50 }
 0x156   : > { %v1006_v57 = vadd.f32 %v998_v51, %v944_v52  ;;  %v1019_v1 = vmax.f32 %v1003_v53, 0.0 }
 0x157   : > { %v859_v56 = vpop.f32.mrb[2].mxu0  ;;  %v1021_v4 = vmax.f32 %v1005_v54, 0.0  ;;  %v1020_v5 = vmax.f32 %v1004_v55, 0.0 }
 0x158   : > { %v1007_v58 = vadd.f32 %v986_v45, %v859_v56  ;;  %v948_v59 = vpop.f32.mrb[2].mxu1  ;;  %v861_v60 = vpop.f32.mrb[3].mxu0  ;;  %v1022_v9 = vmax.f32 %v1006_v57, 0.0 }
 0x159   : > { %v1009_v61 = vadd.f32 %v994_v47, %v948_v59  ;;  %v1008_v62 = vadd.f32 %v990_v48, %v861_v60  ;;  %v950_v63 = vpop.f32.mrb[3].mxu1 }
 0x15a   : > { %v1023_v2 = vmax.f32 %v1007_v58, 0.0  ;;  %v1010_v3 = vadd.f32 %v998_v51, %v950_v63 }
 0x15b   : > { %v1025_v6 = vmax.f32 %v1009_v61, 0.0  ;;  %v1024_v7 = vmax.f32 %v1008_v62, 0.0  ;;  %v865_v8 = vpop.f32.mrb[4].mxu0 }
 0x15c   : > { %v1035_v10 = vadd.f32 %v1023_v2, %v1019_v1  ;;  %v1026_v11 = vmax.f32 %v1010_v3, 0.0  ;;  %v954_v12 = vpop.f32.mrb[4].mxu1  ;;  %v867_v13 = vpop.f32.mrb[5].mxu0  ;;  %v1011_v0 = vadd.f32 %v986_v45, %v865_v8 }
 0x15d   : > { %v1049_v14 = vadd.f32 %v1025_v6, %v1021_v4  ;;  %v1042_v15 = vadd.f32 %v1024_v7, %v1020_v5  ;;  %v956_v16 = vpop.f32.mrb[5].mxu1  ;;  %v1013_v21 = vadd.f32 %v994_v47, %v954_v12  ;;  %v1012_v22 = vadd.f32 %v990_v48, %v867_v13 }
 0x15e   : > { %v1036_v17 = vrot.slane %v1035_v10, 4  ;;  %v1056_v18 = vadd.f32 %v1026_v11, %v1022_v9  ;;  %v1014_v26 = vadd.f32 %v998_v51, %v956_v16  ;;  %v1027_v36 = vmax.f32 %v1011_v0, 0.0 }
 0x15f   : > { %v1050_v19 = vrot.slane %v1049_v14, 4  ;;  %v1043_v20 = vrot.slane %v1042_v15, 4  ;;  %v871_v23 = vpop.f32.mrb[6].mxu0  ;;  %v1029_v39 = vmax.f32 %v1013_v21, 0.0  ;;  %v1028_v40 = vmax.f32 %v1012_v22, 0.0 }
 0x160   : > { %v1037_v24 = vadd.f32 %v1036_v17, %v1035_v10  ;;  %v1057_v25 = vrot.slane %v1056_v18, 4  ;;  %v1015_v27 = vadd.f32 %v986_v45, %v871_v23  ;;  %v960_v28 = vpop.f32.mrb[6].mxu1  ;;  %v873_v29 = vpop.f32.mrb[7].mxu0  ;;  %v1030_v44 = vmax.f32 %v1014_v26, 0.0 }
 0x161   : > { %v1051_v30 = vadd.f32 %v1050_v19, %v1049_v14  ;;  %v1044_v31 = vadd.f32 %v1043_v20, %v1042_v15  ;;  %v1017_v32 = vadd.f32 %v994_v47, %v960_v28  ;;  %v1016_v33 = vadd.f32 %v990_v48, %v873_v29  ;;  %v962_v34 = vpop.f32.mrb[7].mxu1 }
 0x162   : > { %v1058_v35 = vadd.f32 %v1057_v25, %v1056_v18  ;;  %v1031_v37 = vmax.f32 %v1015_v27, 0.0  ;;  %v1018_v38 = vadd.f32 %v998_v51, %v962_v34  ;;  %v1038_v43 = vrot.slane %v1037_v24, 2 }
 0x163   : > { %v1033_v41 = vmax.f32 %v1017_v32, 0.0  ;;  %v1032_v42 = vmax.f32 %v1016_v33, 0.0  ;;  %v1052_v45 = vrot.slane %v1051_v30, 2  ;;  %v1045_v50 = vrot.slane %v1044_v31, 2 }
 0x164   : > { %v1063_v46 = vadd.f32 %v1031_v37, %v1027_v36  ;;  %v1034_v49 = vmax.f32 %v1018_v38, 0.0  ;;  %v1059_v54 = vrot.slane %v1058_v35, 2  ;;  %v1039_v57 = vadd.f32 %v1038_v43, %v1037_v24 }
 0x165   : > { %v1077_v52 = vadd.f32 %v1033_v41, %v1029_v39  ;;  %v1070_v53 = vadd.f32 %v1032_v42, %v1028_v40  ;;  %v1053_v59 = vadd.f32 %v1052_v45, %v1051_v30  ;;  %v1046_v60 = vadd.f32 %v1045_v50, %v1044_v31  ;;  %v1468_v31 = vld [vmem:[%s2207_s4] ss:$0 sm:$0xff] }
 0x166   : > { %v1064_v47 = vrot.slane %v1063_v46, 4  ;;  %v1084_v48 = vadd.f32 %v1034_v49, %v1030_v44  ;;  %v1060_v63 = vadd.f32 %v1059_v54, %v1058_v35  ;;  %v1040_v5 = vrot.slane %v1039_v57, 1 }
 0x167   : > { %v1078_v55 = vrot.slane %v1077_v52, 4  ;;  %v1071_v56 = vrot.slane %v1070_v53, 4  ;;  %v1054_v8 = vrot.slane %v1053_v59, 1  ;;  %v1047_v11 = vrot.slane %v1046_v60, 1 }
 0x168   : > { %v1065_v58 = vadd.f32 %v1064_v47, %v1063_v46  ;;  %v1085_v51 = vrot.slane %v1084_v48, 4  ;;  %v1061_v14 = vrot.slane %v1060_v63, 1  ;;  %v1041_v17 = vadd.f32 %v1040_v5, %v1039_v57 }
 0x169   : > { %v1079_v61 = vadd.f32 %v1078_v55, %v1077_v52  ;;  %v1072_v62 = vadd.f32 %v1071_v56, %v1070_v53  ;;  %v1055_v19 = vadd.f32 %v1054_v8, %v1053_v59  ;;  %v1048_v21 = vadd.f32 %v1047_v11, %v1046_v60 }
 0x16a   : > { %v1066_v1 = vrot.slane %v1065_v58, 2  ;;  %v1086_v2 = vadd.f32 %v1085_v51, %v1084_v48  ;;  %v1062_v23 = vadd.f32 %v1061_v14, %v1060_v63 }
 0x16b   : > { %v1080_v3 = vrot.slane %v1079_v61, 2  ;;  %v1073_v4 = vrot.slane %v1072_v62, 2 }
 0x16c   : > { %v1067_v6 = vadd.f32 %v1066_v1, %v1065_v58  ;;  %v1087_v7 = vrot.slane %v1086_v2, 2 }
 0x16d   : > { %v1081_v9 = vadd.f32 %v1080_v3, %v1079_v61  ;;  %v1074_v10 = vadd.f32 %v1073_v4, %v1072_v62 }
 0x16e   : > { %v1068_v12 = vrot.slane %v1067_v6, 1  ;;  %v1088_v13 = vadd.f32 %v1087_v7, %v1086_v2 }
 0x16f   : > { %v1082_v15 = vrot.slane %v1081_v9, 1  ;;  %v1075_v16 = vrot.slane %v1074_v10, 1 }
 0x170   : > { %v1069_v18 = vadd.f32 %v1068_v12, %v1067_v6  ;;  %v1089_v0 = vrot.slane %v1088_v13, 1 }
 0x171   : > { %v1083_v20 = vadd.f32 %v1082_v15, %v1081_v9  ;;  %v1076_v22 = vadd.f32 %v1075_v16, %v1074_v10 }
 0x172   : > { %v1090_v24 = vadd.f32 %v1089_v0, %v1088_v13  ;;  %v1171_v25 = vsel %vm1170_vm2, %v1069_v18, %v1041_v17 }
 0x173   : > { %v1172_v26 = vsel %vm1170_vm2, %v1076_v22, %v1048_v21  ;;  %v1173_v27 = vsel %vm1170_vm2, %v1083_v20, %v1055_v19 }
 0x174   : > { %1243 = vmatprep.mubr.f32.mxu0 %v1172_v26  ;;  %v1174_v28 = vsel %vm1170_vm2, %v1090_v24, %v1062_v23 }
 0x175   : > { %1313 = vmatprep.mubr.f32.mxu1 %v1174_v28  ;;  %1244 = vmatmul.mubr.f32.vlgmr.msra.gmra.mrb[8].mxu0 %v1171_v25 }
 0x176   : > { %1314 = vmatmul.mubr.f32.vlgmr.msra.gmra.mrb[8].mxu1 %v1173_v27 }
 0x248   : > { %v1505_v29 = vpop.f32.mrb[8].mxu0 }
 0x249   : > { %v1540_v30 = vpop.f32.mrb[8].mxu1  ;;  %v1506_v32 = vpop.f32.mrb[9].mxu0 }
 0x24a   : > { %v1507_v33 = vadd.f32 %v1506_v32, %v1505_v29  ;;  %v1541_v34 = vpop.f32.mrb[9].mxu1 }
 0x24b   : > { %v1542_v35 = vadd.f32 %v1541_v34, %v1540_v30 }
 0x24c   : > { %v1246_v36 = vadd.f32 %v1507_v33, %v1468_v31 }
 0x24e   : > { %v1316_v37 = vadd.f32 %v1542_v35, %v1246_v36 }
 0x250   : > { %1319 = vst [vmem:[%s250_s25] sm:$0x3] %v1316_v37 }
 0x251   : > { %1846 = shalt.err (!%p1843_p11)
}
 0x252   : > { %s1847_s13 = scalar_lea.hbm %s2161_s8, 32  ;;  %s1851_s16 = scalar_lea.hbm %s2208_s5, 64 }
 0x253   : > { %p1848_p13 = scmp.ne.s32.totalorder %s2161_s8, %s1847_s13  ;;  %p1852_p6 = scmp.lt.u32.totalorder %s2161_s8, %s2208_s5 }
 0x254   : > { %p1853_p9 = scmp.lt.u32.totalorder %s1851_s16, %s1847_s13  ;;  %p1855_p10 = scmp.lt.u32.totalorder %s1847_s13, %s2161_s8 }
 0x255   : > { %p1849_p0 = pnand %p1848_p13, %p2222_p1 }
 0x256   : > { %p1854_p12 = por %p1853_p9, %p1852_p6 }
 0x257   : > { %p1850_p5 = pneg %p1849_p0 }
 0x258   : > { %p1856_p2 = por %p1855_p10, %p1854_p12 }
 0x25a   : > { %p1857_p3 = pnand %p1856_p2, %p1850_p5 }
 0x25c   : > { %1860 = shalt.err (!%p1857_p3)
}
 0x25d   : > { %1720 = dma.vmem_to_hbm [thread:$0]  (%p2222_p1), %s2163_s26, 32, %s2161_s8, %s1321_s10  }
 0x25e PF: > { %p1737_p4 = scmp.ge.s32.totalorder %s1903_s21, 2  ;;  %s1346_s23 = sand.u32 1, %s1891_s18  }
 0x25f   : > { %p2223_p7 = scmp.ne.s32.totalorder %s2213_s29, 0  ;;  %s1347_s25 = scalar_lea.sflag [#allocation4], %s1346_s23 }
 0x261   : > { %p1730_p8 = pnand %p1737_p4, %p2223_p7 }
 0x263   : > { %1886 = dma.done.wait (!%p1730_p8), %s1347_s25, 32  }
 0x264   : > { %1888 = vsyncadd (!%p1730_p8), %s1347_s25, 4294967264  ;;  %p17_p11 = scmp.ge.s32.totalorder %s1968_s24, 4   ;;  %s2224_s18 = smov %s1895_s19 }
 0x265   : > { %s2225_s19 = smov %s1899_s20  ;;  %s2226_s20 = smov %s1979_s27 }
 0x266   : > { %s2227_s21 = smov %s1968_s24  ;;  %19 = sbr.rel (!%p17_p11) target bundleno = 5 (0x5), region = 87 }
 0x26d   :  { %1352 = vsyncpa [#allocation3], 1 }
 0x26e   :  { %1354 = vsyncpa [#allocation3 + $0x1], 1 }
 0x26f   :  { %1355 = vsyncpa [#allocation6], 1 }
 0x270   :  { %1356 = vsyncpa [#allocation4], 1 }
 0x271   :  { %1358 = vsyncpa [#allocation4 + $0x1], 1 }

</bundles_post_ra>
